<compile_context>
chip_gen: v6e
topology: v6e:2x2x1
jax: 0.10.0
libtpu: 0.0.40
codegen_flags: <defaults>
</compile_context>

<pallas_src>
import jax
import jax.numpy as jnp
from jax.experimental import pallas as pl
from jax.experimental.pallas import tpu as pltpu

LANE = 128                           # TPU lane width
ONEHOT_VMEM_BUDGET = 4 * 1024 * 1024  # bytes allowed for the (T, BLK) one-hot
MAX_BLK_CAP = 2048                   # upper bound on BLK (MXU N dim)


def _round_up(x, m):
    return pl.cdiv(x, m) * m


def _gather_t_kernel(idx_ref, tab_t_ref, out_ref):
    # idx_ref  : VMEM (1, BLK) int32 — flat row indices, laid along lanes
    # tab_t_ref: VMEM (H, T)         — transposed gather table (constant block)
    # out_ref  : VMEM (H, BLK)       — gathered rows, lane-dense output
    t = tab_t_ref.shape[1]
    blk = out_ref.shape[1]

    idx = idx_ref[...]                                            # (1, BLK)
    iota = jax.lax.broadcasted_iota(jnp.int32, (t, blk), 0)       # (T, BLK)
    one_hot = (iota == idx).astype(tab_t_ref.dtype)               # (T, BLK)

    if jnp.issubdtype(tab_t_ref.dtype, jnp.floating):
        acc_dtype = jnp.float32
    else:
        acc_dtype = jnp.int32

    out = jnp.dot(tab_t_ref[...], one_hot,
                  preferred_element_type=acc_dtype)               # (H, BLK)
    out_ref[...] = out.astype(out_ref.dtype)


def index_gather_transposed(table, idx):
    """Lane-dense gather: returns (out_t, n) with out_t = table[idx.ravel()].T
    padded along the gathered axis to a multiple of 128 lanes."""
    t, h = table.shape
    flat = idx.reshape(-1).astype(jnp.int32)
    # PyTorch aten.index allows negative indices: wrap them.
    flat = jnp.where(flat < 0, flat + t, flat)
    n = int(flat.shape[0])

    # Pad the gathered axis to a multiple of the lane width (unmasked stores).
    n_pad = _round_up(n, LANE)

    # BLK = MXU N dim.  Keep it 256-aligned (v6e/v7x MXU) when tiling and cap
    # it so the (T, BLK) f32 one-hot stays well inside every generation's
    # scoped VMEM (v7x has only 64 MiB physical / 32 MiB scoped default).
    max_blk = (ONEHOT_VMEM_BUDGET // (4 * t)) // 256 * 256
    max_blk = max(256, min(MAX_BLK_CAP, max_blk))
    if n_pad <= max_blk:
        blk = n_pad                       # single grid step: no per-step overhead
    else:
        blk = max_blk
        n_pad = _round_up(n_pad, blk)     # even blocks; tail cost only on last tile

    if n_pad != n:
        # Pad with index 0 (a valid row); padded columns are sliced off later.
        flat = jnp.pad(flat, (0, n_pad - n))
    idx_row = flat.reshape(1, n_pad)
    tab_t = table.T                        # (H, T): lane-dense MXU LHS

    out_t = pl.pallas_call(
        _gather_t_kernel,
        out_shape=jax.ShapeDtypeStruct((h, n_pad), table.dtype),
        grid=(n_pad // blk,),
        in_specs=[
            pl.BlockSpec((1, blk), lambda i: (0, i)),   # indices along lanes
            pl.BlockSpec((h, t), lambda i: (0, 0)),     # full table, constant block
        ],
        out_specs=pl.BlockSpec((h, blk), lambda i: (0, i)),
        compiler_params=pltpu.CompilerParams(
            dimension_semantics=("parallel",),          # shards across v7x's 2 TCs
            vmem_limit_bytes=32 * 1024 * 1024),
    )(idx_row, tab_t)
    return out_t, n


def index_gather(table, idx):
    """Pallas equivalent of table[idx.reshape(-1)] (PyTorch aten.index),
    module-exact (N, H) layout."""
    out_t, n = index_gather_transposed(table, idx)
    # Consumers that want the BEiT (H, N) layout should call
    # index_gather_transposed directly and skip this transpose.
    return out_t[:, :n].T


def pattern_forward(arg1_1, arg223_1):
    """Mirror of PatternModule.forward."""
    return index_gather(arg1_1, arg223_1)


if __name__ == "__main__":
    key = jax.random.PRNGKey(0)
    k_tab, k_idx, k_tab2, k_idx2 = jax.random.split(key, 4)

    # BEiT-style relative-position-bias gather at small shapes:
    #   arg1_1  : relative_position_bias_table  [T=32, H=4]
    #   arg223_1: relative_position_index       [8, 8] with values in [0, T)
    T, H = 32, 4
    arg1_1 = jax.random.normal(k_tab, (T, H), dtype=jnp.float32)
    arg223_1 = jax.random.randint(k_idx, (8, 8), 0, T, dtype=jnp.int32)

    out = jax.block_until_ready(pattern_forward(arg1_1, arg223_1))
    ref = arg1_1[arg223_1.reshape(-1)]
    assert out.shape == ref.shape == (64, H)
    # One-hot matmul gather is bit-exact for f32 tables.
    assert jnp.array_equal(out, ref), "mismatch vs reference gather"

    # Robustness: non-multiple-of-128 length + a negative index (wrapped).
    idx_odd = jnp.array([3, -1, 0, 17, 5], dtype=jnp.int32)
    out2 = jax.block_until_ready(index_gather(arg1_1, idx_odd))
    ref2 = arg1_1[jnp.where(idx_odd < 0, idx_odd + T, idx_odd)]
    assert out2.shape == ref2.shape == (5, H)
    assert jnp.array_equal(out2, ref2), "mismatch on padded / negative-index case"

    # Robustness: multi-step tiled grid (n_pad > BLK) exercises the pipeline
    # and the "parallel" gathered axis.
    T2, H2 = 40, 8
    tab2 = jax.random.normal(k_tab2, (T2, H2), dtype=jnp.float32)
    idx_big = jax.random.randint(k_idx2, (2300,), 0, T2, dtype=jnp.int32)
    out3 = jax.block_until_ready(index_gather(tab2, idx_big))
    ref3 = tab2[idx_big]
    assert out3.shape == ref3.shape == (2300, H2)
    assert jnp.array_equal(out3, ref3), "mismatch on tiled multi-step case"

    print("KERNEL_OK")
</pallas_src>

<mosaic_0001>
module attributes {stable_mosaic.version = 11 : i64} {
  func.func @_gather_t_kernel(%arg0: i32, %arg1: memref<1x128xi32, #tpu.memory_space<vmem>>, %arg2: memref<4x32xf32, #tpu.memory_space<vmem>>, %arg3: memref<4x128xf32, #tpu.memory_space<vmem>>) attributes {dimension_semantics = [#tpu.dimension_semantics<parallel>], iteration_bounds = array<i64: 1>, scalar_prefetch = 0 : i64, scratch_operands = 0 : i64, tpu.core_type = #tpu.core_type<tc>, window_params = [{transform_indices = @transform_0, window_bounds = array<i64: 1, 128>}, {pipeline_mode = #tpu.pipeline_mode<synchronous>, transform_indices = @transform_1, window_bounds = array<i64: 4, 32>}, {transform_indices = @transform_2, window_bounds = array<i64: 4, 128>}]} {
    %c0 = arith.constant 0 : index
    %c0_0 = arith.constant 0 : index
    %0 = vector.load %arg1[%c0, %c0_0] : memref<1x128xi32, #tpu.memory_space<vmem>>, vector<1x128xi32>
    %1 = tpu.iota {dimensions = array<i32: 0>} : vector<32x128xi32>
    %2 = vector.broadcast %0 : vector<1x128xi32> to vector<32x128xi32>
    %3 = arith.cmpi eq, %1, %2 : vector<32x128xi32>
    %4 = arith.extui %3 : vector<32x128xi1> to vector<32x128xi32>
    %5 = arith.sitofp %4 : vector<32x128xi32> to vector<32x128xf32>
    %c0_1 = arith.constant 0 : index
    %c0_2 = arith.constant 0 : index
    %6 = vector.load %arg2[%c0_1, %c0_2] : memref<4x32xf32, #tpu.memory_space<vmem>>, vector<4x32xf32>
    %cst = arith.constant dense<0.000000e+00> : vector<4x128xf32>
    %7 = tpu.matmul %6, %5, %cst {dimension_numbers = #tpu.dot_dimension_numbers<[1], [0], [0], [1], [0, 0, 1, 1], [], []>} : vector<4x32xf32>, vector<32x128xf32>, vector<4x128xf32> -> vector<4x128xf32>
    %c0_3 = arith.constant 0 : index
    %c0_4 = arith.constant 0 : index
    %8 = vector.load %arg3[%c0_3, %c0_4] : memref<4x128xf32, #tpu.memory_space<vmem>>, vector<4x128xf32>
    tpu.vector_store %arg3[%c0_3, %c0_4], %7 {strides = array<i32>} : memref<4x128xf32, #tpu.memory_space<vmem>>, vector<4x128xf32>,
    return
  }
  func.func @transform_0(%arg0: i32) -> (i32, i32) {
    %c0_i32 = arith.constant 0 : i32
    %c0_i32_0 = arith.constant 0 : i32
    return %c0_i32, %arg0 : i32, i32
  }
  func.func @transform_1(%arg0: i32) -> (i32, i32) {
    %c0_i32 = arith.constant 0 : i32
    %c0_i32_0 = arith.constant 0 : i32
    %c0_i32_1 = arith.constant 0 : i32
    return %c0_i32, %c0_i32_0 : i32, i32
  }
  func.func @transform_2(%arg0: i32) -> (i32, i32) {
    %c0_i32 = arith.constant 0 : i32
    %c0_i32_0 = arith.constant 0 : i32
    return %c0_i32, %arg0 : i32, i32
  }
}

</mosaic_0001>

<bundles_post_ra>
// kernel: tpu_custom_call.1
= control target key start
LH: loop header
LB: loop body
LE: loop exit
PB: predicated region body
PF: predicated region fallthrough
CT: control target
= control target key end

     0   :  { %7 = vsyncpa [#allocation3], 0  ;;  %s278_s0 = inlined_call_operand.hbm [shape: s32[1,128], index: 0, kind: input, shape index: {}]   ;;  %s279_s1 = inlined_call_operand.hbm [shape: f32[4,32], index: 1, kind: input, shape index: {}]   ;;  %s280_s2 = inlined_call_operand.hbm [shape: f32[4,128], index: 2, kind: output, shape index: {}]  }
   0x1   :  { %8 = vsyncpa [#allocation6], 0 }
   0x2   :  { %9 = vsyncpa [#allocation4], 0  ;;  %s248_s9 = smov [#allocation2]   ;;  %s249_s11 = smov [#allocation5]  }
   0x3   :  { %s16_s10 = sshll.u32 %s248_s9, 4  ;;  %s26_s12 = sshll.u32 %s249_s11, 4  ;;  %s17_s10 = int_to_ptr.vmem [resolvable:$true] %s16_s10  ;;  %s27_s12 = int_to_ptr.vmem [resolvable:$true] %s26_s12 }
   0x4   :  { %s190_s13 = scalar_lea.vmem %s17_s10, 16  ;;  %s194_s14 = scalar_lea.vmem %s17_s10, 32 }
   0x5   :  { %p191_p0 = scmp.ne.s32.totalorder %s17_s10, %s190_s13  ;;  %p195_p1 = scmp.lt.s32.totalorder %s17_s10, %s17_s10 }
   0x6   :  { %p196_p2 = scmp.lt.s32.totalorder %s194_s14, %s190_s13 }
   0x8   :  { %p197_p3 = por %p196_p2, %p195_p1 }
   0xa   :  { %p198_p4 = pnand %p197_p3, %p191_p0 }
   0xc   :  { %201 = shalt.err (!%p198_p4)
}
   0xd   :  { %19 = dma.hbm_to_vmem [thread:$0]  %s278_s0, 16, %s17_s10, [#allocation3]  }
   0xe   :  { %s210_s17 = scalar_lea.vmem %s27_s12, 64  ;;  %p215_p6 = scmp.lt.s32.totalorder %s27_s12, %s27_s12 }
   0xf   :  { %p211_p5 = scmp.ne.s32.totalorder %s27_s12, %s210_s17  ;;  %p216_p7 = scmp.lt.s32.totalorder %s210_s17, %s210_s17 }
  0x11   :  { %p217_p8 = por %p216_p7, %p215_p6 }
  0x13   :  { %p218_p9 = pnand %p217_p8, %p211_p5 }
  0x15   :  { %221 = shalt.err (!%p218_p9)
}
  0x16   :  { %29 = dma.hbm_to_vmem [thread:$0]  %s279_s1, 64, %s27_s12, [#allocation6]  }
  0x17   :  { %242 = dma.done.wait [#allocation3], 16  }
  0x18   :  { %243 = vsyncadd [#allocation3], 4294967280 }
  0x19   :  { %244 = dma.done.wait [#allocation6], 64  }
  0x1a   :  { %245 = vsyncadd [#allocation6], 4294967232  ;;  %v37_v0 = vlaneseq  ;;  %v250_v1 = vmov 0.0   ;;  %vm251_vm0 = vmmov 0   ;;  %v150_v6 = vld [vmem:[#allocation2] ss:$0 sm:$0xff] }
  0x1b   :  { %165 = vmatprep.subr.mxu0 %v250_v1  ;;  %173 = vmatprep.mubr.msk.f32.mxu0 %vm251_vm0, %v250_v1  ;;  %v252_v7 = vmov 1.0   ;;  %v58_v8 = vld [vmem:[#allocation5] sm:$0xf]  ;;  %vm59_vm5 = vcmask 261120   ;;  %s253_s0 = smov [#allocation7]  }
  0x1c   :  { %v38_v2 = vshrl.u32 %v37_v0, 7  ;;  %s140_s1 = sshll.u32 %s253_s0, 4  ;;  %s141_s1 = int_to_ptr.vmem [resolvable:$true] %s140_s1 }
  0x1d   :  { %s222_s20 = scalar_lea.vmem %s141_s1, 64  ;;  %p227_p11 = scmp.lt.s32.totalorder %s141_s1, %s141_s1 }
  0x1e   :  { %v41_v3 = vadd.s32 24, %v38_v2  ;;  %v40_v4 = vadd.s32 16, %v38_v2  ;;  %v39_v5 = vadd.s32 8, %v38_v2  ;;  %vm46_vm4 = vcmp.eq.s32.totalorder %v38_v2, %v150_v6  ;;  %p223_p10 = scmp.ne.s32.totalorder %s141_s1, %s222_s20  ;;  %p228_p12 = scmp.lt.s32.totalorder %s222_s20, %s222_s20 }
  0x20   :  { %vm49_vm1 = vcmp.eq.s32.totalorder %v41_v3, %v150_v6  ;;  %vm48_vm2 = vcmp.eq.s32.totalorder %v40_v4, %v150_v6  ;;  %vm47_vm3 = vcmp.eq.s32.totalorder %v39_v5, %v150_v6  ;;  %p229_p13 = por %p228_p12, %p227_p11 }
  0x21   :  { %166 = vmatpush3.msk.msra.mxu0 %vm49_vm1, %v252_v7 }
  0x22   :  { %167 = vmatprep.subr.mxu0 %v250_v1  ;;  %p230_p0 = pnand %p229_p13, %p223_p10 }
  0x23   :  { %168 = vmatpush3.msk.msra.mxu0 %vm48_vm2, %v252_v7 }
  0x24   :  { %169 = vmatprep.subr.mxu0 %v250_v1 }
  0x25   :  { %170 = vmatpush3.msk.msra.mxu0 %vm47_vm3, %v252_v7 }
  0x26   :  { %171 = vmatprep.subr.mxu0 %v250_v1 }
  0x27   :  { %172 = vmatpush3.msk.msra.mxu0 %vm46_vm4, %v252_v7 }
  0x28   :  { %174 = vmatmul.mubr.msk.f32.vlgmr.msra.gmra.mxu0 %vm59_vm5, %v58_v8 }
  0xe8   :  { %v129_v9 = vpop.f32.mrf.mxu0 }
  0xe9   :  { %133 = vst [vmem:[#allocation7] sm:$0xf] %v129_v9 }
  0xea   :  { %v175_v10 = vpop.f32.mrf.mxu0 }
  0xeb   :  { %233 = shalt.err (!%p230_p0)
}
  0xec   :  { %143 = dma.vmem_to_hbm [thread:$0]  %s141_s1, 64, %s280_s2, [#allocation4]  }
  0xed   :  { %246 = dma.done.wait [#allocation4], 64  }
  0xee   :  { %247 = vsyncadd [#allocation4], 4294967232 }
  0xef   :  { %147 = vsyncpa [#allocation3], 1 }
  0xf0   :  { %148 = vsyncpa [#allocation6], 1 }
  0xf1   :  { %149 = vsyncpa [#allocation4], 1 }

</bundles_post_ra>
